<compile_context>
chip_gen: v7x
topology: tpu7x:2x2x1
jax: 0.10.0
libtpu: 0.0.40
codegen_flags: <defaults>
</compile_context>

<pallas_src>
import functools

import jax
import jax.numpy as jnp
from jax.experimental import pallas as pl
from jax.experimental.pallas import tpu as pltpu


def _round_up(x, m):
    return ((x + m - 1) // m) * m


def _gaussian_mlp_kernel(x_ref, w0_ref, w_ref, b_ref, out_ref, *,
                         n_layers, y_dim):
    """One batch tile of the Gaussian-MLP forward, fully in VMEM.

    x_ref  : (TM, x_dim_p)      bf16/f32   padded inputs
    w0_ref : (x_dim_p, Dp)      bf16/f32   layer-0 weight (zero padded)
    w_ref  : (L-1, Dp, Dp)      bf16/f32   layers 1..L-1 weights (zero padded)
    b_ref  : (L, 1, Dp)         f32        biases (zero padded)
    out_ref: (TM, OUT_P)        f32        lane-dense output (OUT_P % 128 == 0)
    """
    cdt = w0_ref.dtype

    # Layer 0: (TM, x_dim_p) @ (x_dim_p, Dp) -> f32 accumulator.
    h = jnp.dot(x_ref[...], w0_ref[...], preferred_element_type=jnp.float32)
    h = h + b_ref[0]
    h = jnp.maximum(h, 0.0)

    # Layers 1 .. L-1 (ReLU on all but the final one).
    for l in range(1, n_layers):
        h = jnp.dot(h.astype(cdt), w_ref[l - 1],
                    preferred_element_type=jnp.float32)
        h = h + b_ref[l]
        if l < n_layers - 1:
            h = jnp.maximum(h, 0.0)

    # Epilogue: split (mean | variance) along the feature axis and apply
    # elu(variance) + 1 on the variance half only (padded cols are discarded
    # by the wrapper).
    out_w = out_ref.shape[-1]
    h = h[:, :out_w]
    col = jax.lax.broadcasted_iota(jnp.int32, h.shape, dimension=1)
    var_mask = (col >= y_dim) & (col < 2 * y_dim)
    # elu(v) + 1 == v + 1 if v > 0 else exp(v); clamp exp arg to avoid inf in
    # the unselected branch.
    elu_p1 = jnp.where(h > 0.0, h + 1.0, jnp.exp(jnp.minimum(h, 0.0)))
    out_ref[...] = jnp.where(var_mask, elu_p1, h)


def neural_gaussian_forward(x, params, *, block_rows=1024,
                            compute_dtype=jnp.bfloat16):
    """NeuralGaussianRegressor.forward via a tiled Pallas TPU kernel.

    x      : (N, x_dim) float32
    params : list of (W, b); W is (d_in, d_out) (pre-transposed vs. torch's
             (out, in)), b is (d_out,). Last layer has d_out = 2 * y_dim.
    returns: (N, 2 * y_dim) float32 = concat([mean, elu(var) + 1], -1)
    """
    n, x_dim = x.shape
    n_layers = len(params)
    assert n_layers >= 2, "NeuralGaussianRegressor has >= 2 linear layers"
    out_dim = params[-1][0].shape[1]
    assert out_dim % 2 == 0
    y_dim = out_dim // 2

    # Lane / sublane padding.
    d_pad = _round_up(max(w.shape[1] for w, _ in params), 128)
    out_pad = _round_up(out_dim, 128)
    x_dim_p = _round_up(x_dim, 16)

    # Row tiling: big tiles amortize the ~0.35 us/step overhead; clamp for
    # tiny batches so we do not pad 8 rows up to 1024.
    tm = min(block_rows, _round_up(n, 8))
    n_pad = _round_up(n, tm)

    # ---- Host-side packing (cheap one-time XLA pads / casts). ----
    x_p = jnp.pad(x, ((0, n_pad - n), (0, x_dim_p - x_dim))).astype(compute_dtype)

    w0 = params[0][0]
    w0_p = jnp.pad(w0, ((0, x_dim_p - w0.shape[0]),
                        (0, d_pad - w0.shape[1]))).astype(compute_dtype)

    w_rest = [jnp.pad(w, ((0, d_pad - w.shape[0]), (0, d_pad - w.shape[1])))
              for w, _ in params[1:]]
    w_slab = jnp.stack(w_rest).astype(compute_dtype)           # (L-1, Dp, Dp)

    b_rows = [jnp.pad(b.reshape(1, -1), ((0, 0), (0, d_pad - b.shape[-1])))
              for _, b in params]
    b_slab = jnp.stack(b_rows).astype(jnp.float32)              # (L, 1, Dp)

    kernel = functools.partial(_gaussian_mlp_kernel,
                               n_layers=n_layers, y_dim=y_dim)

    in_bytes = x_p.dtype.itemsize
    flops = 2 * n_pad * (x_dim_p * d_pad + (n_layers - 1) * d_pad * d_pad)
    bytes_accessed = (n_pad * x_dim_p * in_bytes                # x stream
                      + n_pad * out_pad * 4                     # output
                      + w0_p.size * in_bytes
                      + w_slab.size * in_bytes
                      + b_slab.size * 4)

    out = pl.pallas_call(
        kernel,
        out_shape=jax.ShapeDtypeStruct((n_pad, out_pad), jnp.float32),
        grid=(n_pad // tm,),
        in_specs=[
            pl.BlockSpec((tm, x_dim_p), lambda i: (i, 0)),
            pl.BlockSpec((x_dim_p, d_pad), lambda i: (0, 0)),
            pl.BlockSpec((n_layers - 1, d_pad, d_pad), lambda i: (0, 0, 0)),
            pl.BlockSpec((n_layers, 1, d_pad), lambda i: (0, 0, 0)),
        ],
        out_specs=pl.BlockSpec((tm, out_pad), lambda i: (i, 0)),
        compiler_params=pltpu.CompilerParams(
            dimension_semantics=("parallel",)),
        cost_estimate=pl.CostEstimate(
            flops=int(flops),
            transcendentals=int(n_pad * out_pad),
            bytes_accessed=int(bytes_accessed)),
    )(x_p, w0_p, w_slab, b_slab)

    # Glue: drop row / lane padding -> (N, 2 * y_dim).
    return out[:n, :out_dim]


def init_params(key, x_dim, y_dim, hid_sizes):
    """Deterministic init matching _initialize_net() shapes.

    linears[0]: Linear(x_dim, hid_sizes[0])
    linears[i]: Linear(hid_sizes[i-1], hid_sizes[i])
    linears[-1]: Linear(hid_sizes[-1], 2 * y_dim)
    Weights stored pre-transposed as (in, out); biases as (out,).
    """
    dims = [x_dim] + list(hid_sizes) + [2 * y_dim]
    params = []
    for i in range(len(dims) - 1):
        d_in, d_out = dims[i], dims[i + 1]
        key, kw, kb = jax.random.split(key, 3)
        bound = 1.0 / (d_in ** 0.5)
        w = jax.random.uniform(kw, (d_in, d_out), jnp.float32, -bound, bound)
        b = jax.random.uniform(kb, (d_out,), jnp.float32, -bound, bound)
        params.append((w, b))
    return params


def _reference_forward(x, params, compute_dtype=jnp.bfloat16):
    """Pure-JAX reference with the same bf16-in / f32-accumulate recipe."""
    out_dim = params[-1][0].shape[1]
    y_dim = out_dim // 2
    n_layers = len(params)
    h = x.astype(compute_dtype)
    for i, (w, b) in enumerate(params):
        h = jnp.dot(h, w.astype(compute_dtype),
                    preferred_element_type=jnp.float32) + b
        if i < n_layers - 1:
            h = jnp.maximum(h, 0.0).astype(compute_dtype)
    mean = h[:, :y_dim]
    var = h[:, y_dim:]
    var = jnp.where(var > 0.0, var + 1.0, jnp.exp(jnp.minimum(var, 0.0)))
    return jnp.concatenate([mean, var], axis=-1)


if __name__ == "__main__":
    key = jax.random.PRNGKey(0)

    # Small shapes consistent with the module: x_dim=8 input features,
    # y_dim=2 targets (final layer emits 2*y_dim=4), two hidden layers of 32.
    x_dim, y_dim = 8, 2
    hid_sizes = [32, 32]
    batch = 16

    key, kx = jax.random.split(key)
    x = jax.random.normal(kx, (batch, x_dim), dtype=jnp.float32)
    params = init_params(key, x_dim, y_dim, hid_sizes)

    out = neural_gaussian_forward(x, params)
    out = jax.block_until_ready(out)

    ref = _reference_forward(x, params)
    assert out.shape == (batch, 2 * y_dim)
    assert jnp.allclose(out, ref, atol=2e-3, rtol=2e-3), \
        float(jnp.max(jnp.abs(out - ref)))
    # Variance half of a Gaussian head must be strictly positive.
    assert bool(jnp.all(out[:, y_dim:] > 0.0))

    print("KERNEL_OK")
</pallas_src>

<mosaic_0001>
module attributes {stable_mosaic.version = 11 : i64} {
  func.func @_gaussian_mlp_kernel(%arg0: i32, %arg1: memref<16x16xbf16, #tpu.memory_space<vmem>>, %arg2: memref<16x128xbf16, #tpu.memory_space<vmem>>, %arg3: memref<2x128x128xbf16, #tpu.memory_space<vmem>>, %arg4: memref<3x1x128xf32, #tpu.memory_space<vmem>>, %arg5: memref<16x128xf32, #tpu.memory_space<vmem>>) attributes {dimension_semantics = [#tpu.dimension_semantics<parallel>], iteration_bounds = array<i64: 1>, scalar_prefetch = 0 : i64, scratch_operands = 0 : i64, tpu.core_type = #tpu.core_type<tc>, window_params = [{transform_indices = @transform_0, window_bounds = array<i64: 16, 16>}, {pipeline_mode = #tpu.pipeline_mode<synchronous>, transform_indices = @transform_1, window_bounds = array<i64: 16, 128>}, {pipeline_mode = #tpu.pipeline_mode<synchronous>, transform_indices = @transform_2, window_bounds = array<i64: 2, 128, 128>}, {pipeline_mode = #tpu.pipeline_mode<synchronous>, transform_indices = @transform_3, window_bounds = array<i64: 3, 1, 128>}, {transform_indices = @transform_4, window_bounds = array<i64: 16, 128>}]} {
    %c0 = arith.constant 0 : index
    %c0_0 = arith.constant 0 : index
    %0 = vector.load %arg1[%c0, %c0_0] : memref<16x16xbf16, #tpu.memory_space<vmem>>, vector<16x16xbf16>
    %c0_1 = arith.constant 0 : index
    %c0_2 = arith.constant 0 : index
    %1 = vector.load %arg2[%c0_1, %c0_2] : memref<16x128xbf16, #tpu.memory_space<vmem>>, vector<16x128xbf16>
    %cst = arith.constant dense<0.000000e+00> : vector<16x128xf32>
    %2 = tpu.matmul %0, %1, %cst {dimension_numbers = #tpu.dot_dimension_numbers<[1], [0], [0], [1], [0, 0, 1, 1], [], []>} : vector<16x16xbf16>, vector<16x128xbf16>, vector<16x128xf32> -> vector<16x128xf32>
    %c0_3 = arith.constant 0 : index
    %c0_4 = arith.constant 0 : index
    %c0_5 = arith.constant 0 : index
    %3 = vector.load %arg4[%c0_3, %c0_4, %c0_5] : memref<3x1x128xf32, #tpu.memory_space<vmem>>, vector<1x1x128xf32>
    %4 = vector.shape_cast %3 : vector<1x1x128xf32> to vector<1x128xf32>
    %5 = vector.broadcast %4 : vector<1x128xf32> to vector<16x128xf32>
    %6 = arith.addf %2, %5 : vector<16x128xf32>
    %cst_6 = arith.constant 0.000000e+00 : f32
    %7 = vector.broadcast %cst_6 : f32 to vector<16x128xf32>
    %8 = arith.maximumf %6, %7 : vector<16x128xf32>
    %9 = arith.truncf %8 : vector<16x128xf32> to vector<16x128xbf16>
    %c0_7 = arith.constant 0 : index
    %c0_8 = arith.constant 0 : index
    %c0_9 = arith.constant 0 : index
    %10 = vector.load %arg3[%c0_7, %c0_8, %c0_9] : memref<2x128x128xbf16, #tpu.memory_space<vmem>>, vector<1x128x128xbf16>
    %11 = vector.shape_cast %10 : vector<1x128x128xbf16> to vector<128x128xbf16>
    %cst_10 = arith.constant dense<0.000000e+00> : vector<16x128xf32>
    %12 = tpu.matmul %9, %11, %cst_10 {dimension_numbers = #tpu.dot_dimension_numbers<[1], [0], [0], [1], [0, 0, 1, 1], [], []>} : vector<16x128xbf16>, vector<128x128xbf16>, vector<16x128xf32> -> vector<16x128xf32>
    %c1 = arith.constant 1 : index
    %c0_11 = arith.constant 0 : index
    %c0_12 = arith.constant 0 : index
    %13 = vector.load %arg4[%c1, %c0_11, %c0_12] : memref<3x1x128xf32, #tpu.memory_space<vmem>>, vector<1x1x128xf32>
    %14 = vector.shape_cast %13 : vector<1x1x128xf32> to vector<1x128xf32>
    %15 = vector.broadcast %14 : vector<1x128xf32> to vector<16x128xf32>
    %16 = arith.addf %12, %15 : vector<16x128xf32>
    %cst_13 = arith.constant 0.000000e+00 : f32
    %17 = vector.broadcast %cst_13 : f32 to vector<16x128xf32>
    %18 = arith.maximumf %16, %17 : vector<16x128xf32>
    %19 = arith.truncf %18 : vector<16x128xf32> to vector<16x128xbf16>
    %c1_14 = arith.constant 1 : index
    %c0_15 = arith.constant 0 : index
    %c0_16 = arith.constant 0 : index
    %20 = vector.load %arg3[%c1_14, %c0_15, %c0_16] : memref<2x128x128xbf16, #tpu.memory_space<vmem>>, vector<1x128x128xbf16>
    %21 = vector.shape_cast %20 : vector<1x128x128xbf16> to vector<128x128xbf16>
    %cst_17 = arith.constant dense<0.000000e+00> : vector<16x128xf32>
    %22 = tpu.matmul %19, %21, %cst_17 {dimension_numbers = #tpu.dot_dimension_numbers<[1], [0], [0], [1], [0, 0, 1, 1], [], []>} : vector<16x128xbf16>, vector<128x128xbf16>, vector<16x128xf32> -> vector<16x128xf32>
    %c2 = arith.constant 2 : index
    %c0_18 = arith.constant 0 : index
    %c0_19 = arith.constant 0 : index
    %23 = vector.load %arg4[%c2, %c0_18, %c0_19] : memref<3x1x128xf32, #tpu.memory_space<vmem>>, vector<1x1x128xf32>
    %24 = vector.shape_cast %23 : vector<1x1x128xf32> to vector<1x128xf32>
    %25 = vector.broadcast %24 : vector<1x128xf32> to vector<16x128xf32>
    %26 = arith.addf %22, %25 : vector<16x128xf32>
    %27 = tpu.iota {dimensions = array<i32: 1>} : vector<16x128xi32>
    %c2_i32 = arith.constant 2 : i32
    %28 = vector.broadcast %c2_i32 : i32 to vector<16x128xi32>
    %29 = arith.cmpi sge, %27, %28 : vector<16x128xi32>
    %c4_i32 = arith.constant 4 : i32
    %30 = vector.broadcast %c4_i32 : i32 to vector<16x128xi32>
    %31 = arith.cmpi slt, %27, %30 : vector<16x128xi32>
    %32 = arith.andi %29, %31 : vector<16x128xi1>
    %cst_20 = arith.constant 0.000000e+00 : f32
    %33 = vector.broadcast %cst_20 : f32 to vector<16x128xf32>
    %34 = arith.cmpf ogt, %26, %33 : vector<16x128xf32>
    %cst_21 = arith.constant 1.000000e+00 : f32
    %35 = vector.broadcast %cst_21 : f32 to vector<16x128xf32>
    %36 = arith.addf %26, %35 : vector<16x128xf32>
    %cst_22 = arith.constant 0.000000e+00 : f32
    %37 = vector.broadcast %cst_22 : f32 to vector<16x128xf32>
    %38 = arith.minimumf %26, %37 : vector<16x128xf32>
    %39 = math.exp %38 : vector<16x128xf32>
    %40 = arith.select %34, %36, %39 : vector<16x128xi1>, vector<16x128xf32>
    %41 = arith.select %32, %40, %26 : vector<16x128xi1>, vector<16x128xf32>
    %c0_23 = arith.constant 0 : index
    %c0_24 = arith.constant 0 : index
    %42 = vector.load %arg5[%c0_23, %c0_24] : memref<16x128xf32, #tpu.memory_space<vmem>>, vector<16x128xf32>
    tpu.vector_store %arg5[%c0_23, %c0_24], %41 {strides = array<i32>} : memref<16x128xf32, #tpu.memory_space<vmem>>, vector<16x128xf32>,
    return
  }
  func.func @transform_0(%arg0: i32) -> (i32, i32) {
    %c0_i32 = arith.constant 0 : i32
    %c0_i32_0 = arith.constant 0 : i32
    return %arg0, %c0_i32 : i32, i32
  }
  func.func @transform_1(%arg0: i32) -> (i32, i32) {
    %c0_i32 = arith.constant 0 : i32
    %c0_i32_0 = arith.constant 0 : i32
    %c0_i32_1 = arith.constant 0 : i32
    return %c0_i32, %c0_i32_0 : i32, i32
  }
  func.func @transform_2(%arg0: i32) -> (i32, i32, i32) {
    %c0_i32 = arith.constant 0 : i32
    %c0_i32_0 = arith.constant 0 : i32
    %c0_i32_1 = arith.constant 0 : i32
    %c0_i32_2 = arith.constant 0 : i32
    return %c0_i32, %c0_i32_0, %c0_i32_1 : i32, i32, i32
  }
  func.func @transform_3(%arg0: i32) -> (i32, i32, i32) {
    %c0_i32 = arith.constant 0 : i32
    %c0_i32_0 = arith.constant 0 : i32
    %c0_i32_1 = arith.constant 0 : i32
    %c0_i32_2 = arith.constant 0 : i32
    return %c0_i32, %c0_i32_0, %c0_i32_1 : i32, i32, i32
  }
  func.func @transform_4(%arg0: i32) -> (i32, i32) {
    %c0_i32 = arith.constant 0 : i32
    %c0_i32_0 = arith.constant 0 : i32
    return %arg0, %c0_i32 : i32, i32
  }
}

</mosaic_0001>

<bundles_post_ra>
// kernel: tpu_custom_call.1
= control target key start
LH: loop header
LB: loop body
LE: loop exit
PB: predicated region body
PF: predicated region fallthrough
CT: control target
= control target key end

     0   :  { %9 = vsyncpa [#allocation3], 0  ;;  %s743_s0 = inlined_call_operand.hbm [shape: bf16[16,16], index: 0, kind: input, shape index: {}]   ;;  %s744_s1 = inlined_call_operand.hbm [shape: bf16[16,128], index: 1, kind: input, shape index: {}]   ;;  %s745_s2 = inlined_call_operand.hbm [shape: bf16[2,128,128], index: 2, kind: input, shape index: {}]   ;;  %s746_s3 = inlined_call_operand.vmem [shape: f32[3,1,128], index: 3, kind: input, shape index: {}]   ;;  %s747_s4 = inlined_call_operand.hbm [shape: f32[16,128], index: 4, kind: output, shape index: {}]  }
   0x1   :  { %10 = vsyncpa [#allocation6], 0 }
   0x2   :  { %11 = vsyncpa [#allocation4], 0  ;;  %s615_s15 = smov [#allocation5]   ;;  %s616_s17 = smov [#allocation2]  }
   0x3   :  { %s29_s16 = sshll.u32 %s615_s15, 4  ;;  %s17_s18 = sshll.u32 %s616_s17, 4  ;;  %s30_s16 = int_to_ptr.vmem [resolvable:$true] %s29_s16  ;;  %s650_s18 = int_to_ptr.vmem [resolvable:$true] %s17_s18 }
   0x4   :  { %s521_s21 = scalar_lea.hbm %s744_s1, 128 }
   0x5   :  { %p522_p0 = scmp.ne.s32.totalorder %s744_s1, %s521_s21  ;;  %p525_p1 = scmp.lt.u32.totalorder %s521_s21, %s744_s1 }
   0x7   :  { %p527_p2 = pnand %p525_p1, %p522_p0 }
   0x9   :  { %530 = shalt.err (!%p527_p2)
}
   0xa   :  { %s531_s26 = scalar_lea.vmem %s30_s16, 128  ;;  %p536_p4 = scmp.lt.s32.totalorder %s30_s16, %s30_s16 }
   0xb   :  { %p532_p3 = scmp.ne.s32.totalorder %s30_s16, %s531_s26  ;;  %p537_p5 = scmp.lt.s32.totalorder %s531_s26, %s531_s26 }
   0xd   :  { %p538_p6 = por %p537_p5, %p536_p4 }
   0xf   :  { %p539_p7 = pnand %p538_p6, %p532_p3 }
  0x11   :  { %542 = shalt.err (!%p539_p7)
}
  0x12   :  { %s617_s27 = smov 64   ;;  %s618_s28 = smov 4  }
  0x13   :  { %35 = dma.hbm_to_vmem [thread:$0]  %s744_s1, 128, %s30_s16, [#allocation6], %s617_s27, %s617_s27, %s618_s28  }
  0x14   :  { %s543_s7 = scalar_lea.hbm %s743_s0, 128 }
  0x15   :  { %p544_p8 = scmp.ne.s32.totalorder %s743_s0, %s543_s7  ;;  %p547_p9 = scmp.lt.u32.totalorder %s543_s7, %s743_s0 }
  0x17   :  { %p549_p10 = pnand %p547_p9, %p544_p8 }
  0x19   :  { %552 = shalt.err (!%p549_p10)
}
  0x1a   :  { %s553_s12 = scalar_lea.vmem %s650_s18, 128  ;;  %p558_p12 = scmp.lt.s32.totalorder %s650_s18, %s650_s18 }
  0x1b   :  { %p554_p11 = scmp.ne.s32.totalorder %s650_s18, %s553_s12  ;;  %p559_p13 = scmp.lt.s32.totalorder %s553_s12, %s553_s12 }
  0x1d   :  { %p560_p0 = por %p559_p13, %p558_p12 }
  0x1f   :  { %p561_p1 = pnand %p560_p0, %p554_p11 }
  0x21   :  { %564 = shalt.err (!%p561_p1)
}
  0x22   :  { %23 = dma.hbm_to_vmem [thread:$0]  %s743_s0, 128, %s650_s18, [#allocation3], %s617_s27, %s617_s27, %s618_s28  }
  0x23   :  { %s619_s14 = smov [#allocation7]   ;;  %s565_s19 = scalar_lea.hbm %s745_s2, 2048 }
  0x24   :  { %s41_s15 = sshll.u32 %s619_s14, 4  ;;  %p566_p2 = scmp.ne.s32.totalorder %s745_s2, %s565_s19  ;;  %s42_s15 = int_to_ptr.vmem [resolvable:$true] %s41_s15 }
  0x25   :  { %p569_p3 = scmp.lt.u32.totalorder %s565_s19, %s745_s2 }
  0x27   :  { %p571_p4 = pnand %p569_p3, %p566_p2 }
  0x29   :  { %574 = shalt.err (!%p571_p4)
}
  0x2a   :  { %s575_s24 = scalar_lea.vmem %s42_s15, 2048  ;;  %p580_p6 = scmp.lt.s32.totalorder %s42_s15, %s42_s15 }
  0x2b   :  { %p576_p5 = scmp.ne.s32.totalorder %s42_s15, %s575_s24  ;;  %p581_p7 = scmp.lt.s32.totalorder %s575_s24, %s575_s24 }
  0x2d   :  { %p582_p8 = por %p581_p7, %p580_p6 }
  0x2f   :  { %p583_p9 = pnand %p582_p8, %p576_p5 }
  0x31   :  { %586 = shalt.err (!%p583_p9)
}
  0x32   :  { %47 = dma.hbm_to_vmem [thread:$0]  %s745_s2, 2048, %s42_s15, [#allocation6], %s617_s27, %s617_s27, %s618_s28  }
  0x33   :  { %609 = dma.done.wait [#allocation3], 128  }
  0x34   :  { %610 = vsyncadd [#allocation3], 4294967168 }
  0x35   :  { %611 = dma.done.wait [#allocation6], 2176  }
  0x36   :  { %612 = vsyncadd [#allocation6], 4294965120  ;;  %v620_v0 = vmov 0.0   ;;  %vm621_vm0 = vmmov 0   ;;  %v499_v1 = vld [vmem:[#allocation5] sm:$0xff]   ;;  %v500_v2 = vld [vmem:[#allocation2] sm:$0xff]   ;;  %v360_v47 = vlaneseq }
  0x37   :  { %443 = vmatprep.subr.bf16.mxu0 %v620_v0  ;;  %445 = vmatprep.mubr.msk.bf16.mxu0 %vm621_vm0, %v620_v0  ;;  %vm82_vm1 = vcmask 130048   ;;  %v501_v3 = vld [vmem:[#allocation7] sm:$0xff]   ;;  %v502_v4 = vld [vmem:[#allocation7 + $0x8] sm:$0xff]   ;;  %v503_v5 = vld [vmem:[#allocation7 + $0x10] sm:$0xff]   ;;  %s622_s30 = smov [#allocation8]  }
  0x38   :  { %449 = vmatprep.subr.bf16.mxu1 %v620_v0  ;;  %465 = vmatprep.mubr.msk.bf16.mxu1 %vm621_vm0, %v620_v0  ;;  %v504_v6 = vld [vmem:[#allocation7 + $0x18] sm:$0xff]   ;;  %v505_v7 = vld [vmem:[#allocation7 + $0x20] sm:$0xff]   ;;  %v506_v8 = vld [vmem:[#allocation7 + $0x28] sm:$0xff]   ;;  %v361_v51 = vand.u32 127, %v360_v47 }
  0x39   :  { %444 = vmatpush3.bf16.msra.mxu0 %v499_v1  ;;  %450 = vmatpush3.bf16.msra.mxu1 %v501_v3  ;;  %v507_v9 = vld [vmem:[#allocation7 + $0x30] sm:$0xff]   ;;  %v508_v10 = vld [vmem:[#allocation7 + $0x38] sm:$0xff]   ;;  %v509_v11 = vld [vmem:[#allocation7 + $0x40] sm:$0xff]  }
  0x3a   :  { %469 = vmatprep.subr.bf16.mxu0 %v620_v0  ;;  %451 = vmatprep.subr.bf16.mxu1 %v620_v0  ;;  %v510_v12 = vld [vmem:[#allocation7 + $0x48] sm:$0xff]   ;;  %v511_v13 = vld [vmem:[#allocation7 + $0x50] sm:$0xff]   ;;  %v512_v14 = vld [vmem:[#allocation7 + $0x58] sm:$0xff]   ;;  %vm362_vm2 = vcmp.ge.s32.totalorder %v361_v51, 2  ;;  %vm363_vm3 = vcmp.lt.s32.totalorder %v361_v51, 4 }
  0x3b   :  { %v513_v15 = vld [vmem:[#allocation7 + $0x60] sm:$0xff]   ;;  %v514_v16 = vld [vmem:[#allocation7 + $0x68] sm:$0xff]   ;;  %v399_v17 = vld [vmem:[%s746_s3] ss:$0 sm:$0xff] }
  0x3c   :  { %446 = vmatmul.mubr.msk.bf16.vlgmr.msra.gmra.mrb[0].mxu0 %vm82_vm1, %v500_v2  ;;  %v515_v27 = vld [vmem:[#allocation7 + $0x70] sm:$0xff]   ;;  %v516_v28 = vld [vmem:[#allocation7 + $0x78] sm:$0xff]   ;;  %vm364_vm4 = vmand %vm362_vm2, %vm363_vm3 }
  0x3d   :  { %485 = vmatprep.mubr.msk.bf16.mxu0 %vm621_vm0, %v620_v0  ;;  %452 = vmatpush3.bf16.msra.mxu1 %v502_v4  ;;  %v404_v29 = vld [vmem:[%s746_s3 + $0x1] ss:$0 sm:$0xff]  ;;  %v414_v39 = vld [vmem:[%s746_s3 + $0x2] ss:$0 sm:$0xff]  ;;  %s386_s3 = sshll.u32 %s622_s30, 4  ;;  %s387_s3 = int_to_ptr.vmem [resolvable:$true] %s386_s3 }
  0x3e   :  { %453 = vmatprep.subr.bf16.mxu1 %v620_v0  ;;  %470 = vmatpush3.bf16.msra.mxu0 %v509_v11  ;;  %s587_s5 = scalar_lea.vmem %s387_s3, 256  ;;  %p592_p11 = scmp.lt.s32.totalorder %s387_s3, %s387_s3 }
  0x3f   :  { %471 = vmatprep.subr.bf16.mxu0 %v620_v0  ;;  %p588_p10 = scmp.ne.s32.totalorder %s387_s3, %s587_s5  ;;  %p593_p12 = scmp.lt.s32.totalorder %s587_s5, %s587_s5 }
  0x41   :  { %454 = vmatpush3.bf16.msra.mxu1 %v503_v5  ;;  %p594_p13 = por %p593_p12, %p592_p11 }
  0x42   :  { %455 = vmatprep.subr.bf16.mxu1 %v620_v0  ;;  %472 = vmatpush3.bf16.msra.mxu0 %v510_v12 }
  0x43   :  { %473 = vmatprep.subr.bf16.mxu0 %v620_v0  ;;  %p595_p0 = pnand %p594_p13, %p588_p10 }
  0x45   :  { %456 = vmatpush3.bf16.msra.mxu1 %v504_v6 }
  0x46   :  { %457 = vmatprep.subr.bf16.mxu1 %v620_v0  ;;  %474 = vmatpush3.bf16.msra.mxu0 %v511_v13 }
  0x47   :  { %475 = vmatprep.subr.bf16.mxu0 %v620_v0 }
  0x49   :  { %458 = vmatpush3.bf16.msra.mxu1 %v505_v7 }
  0x4a   :  { %459 = vmatprep.subr.bf16.mxu1 %v620_v0  ;;  %476 = vmatpush3.bf16.msra.mxu0 %v512_v14 }
  0x4b   :  { %477 = vmatprep.subr.bf16.mxu0 %v620_v0 }
  0x4d   :  { %460 = vmatpush3.bf16.msra.mxu1 %v506_v8 }
  0x4e   :  { %461 = vmatprep.subr.bf16.mxu1 %v620_v0  ;;  %478 = vmatpush3.bf16.msra.mxu0 %v513_v15 }
  0x4f   :  { %479 = vmatprep.subr.bf16.mxu0 %v620_v0 }
  0x51   :  { %462 = vmatpush3.bf16.msra.mxu1 %v507_v9 }
  0x52   :  { %463 = vmatprep.subr.bf16.mxu1 %v620_v0  ;;  %480 = vmatpush3.bf16.msra.mxu0 %v514_v16 }
  0x53   :  { %481 = vmatprep.subr.bf16.mxu0 %v620_v0 }
  0x55   :  { %464 = vmatpush3.bf16.msra.mxu1 %v508_v10 }
  0x56   :  { %482 = vmatpush3.bf16.msra.mxu0 %v515_v27 }
  0x57   :  { %483 = vmatprep.subr.bf16.mxu0 %v620_v0 }
  0x5a   :  { %484 = vmatpush3.bf16.msra.mxu0 %v516_v28 }
 0x10f   :  { %v120_v18 = vpop.f32.mrb[0].mxu0 }
 0x110   :  { %v121_v19 = vadd.f32 %v399_v17, %v120_v18  ;;  %v447_v20 = vpop.f32.mrb[1].mxu0 }
 0x111   :  { %v123_v21 = vpop.f32.mrb[2].mxu0 }
 0x112   :  { %v124_v22 = vadd.f32 %v399_v17, %v123_v21  ;;  %v448_v23 = vpop.f32.mrb[3].mxu0  ;;  %v127_v24 = vmax.f32 %v121_v19, 0.0 }
 0x114   :  { %v128_v25 = vmax.f32 %v124_v22, 0.0 }
 0x116   :  { %v129_v26 = vpack.c.bf16 %v128_v25, %v127_v24 }
 0x118   :  { %466 = vmatmul.mubr.bf16.vlgmr.msra.gmra.mrb[0].mxu1 %v129_v26 }
 0x1eb   :  { %v236_v30 = vpop.f32.mrb[0].mxu1 }
 0x1ec   :  { %v237_v31 = vadd.f32 %v404_v29, %v236_v30  ;;  %v467_v32 = vpop.f32.mrb[1].mxu1 }
 0x1ed   :  { %v239_v33 = vpop.f32.mrb[2].mxu1 }
 0x1ee   :  { %v240_v34 = vadd.f32 %v404_v29, %v239_v33  ;;  %v468_v35 = vpop.f32.mrb[3].mxu1  ;;  %v243_v36 = vmax.f32 %v237_v31, 0.0 }
 0x1f0   :  { %v244_v37 = vmax.f32 %v240_v34, 0.0 }
 0x1f2   :  { %v245_v38 = vpack.c.bf16 %v244_v37, %v243_v36 }
 0x1f4   :  { %486 = vmatmul.mubr.bf16.vlgmr.msra.gmra.mrb[4].mxu0 %v245_v38 }
 0x2c7   :  { %v353_v40 = vpop.f32.mrb[4].mxu0 }
 0x2c8   :  { %v354_v41 = vadd.f32 %v414_v39, %v353_v40  ;;  %v487_v42 = vpop.f32.mrb[5].mxu0 }
 0x2c9   :  { %v356_v43 = vpop.f32.mrb[6].mxu0 }
 0x2ca   :  { %v369_v44 = vmin.f32 %v354_v41, 0.0  ;;  %v357_v45 = vadd.f32 %v414_v39, %v356_v43  ;;  %v488_v46 = vpop.f32.mrb[7].mxu0  ;;  %v367_v52 = vadd.f32 1.0, %v354_v41  ;;  %vm365_vm5 = vcmp.gt.f32.partialorder %v354_v41, 0.0 }
 0x2cc   :  { %v371_v48 = vmul.f32 1.442695, %v369_v44  ;;  %v370_v49 = vmin.f32 %v357_v45, 0.0  ;;  %v368_v55 = vadd.f32 1.0, %v357_v45  ;;  %vm366_vm6 = vcmp.gt.f32.partialorder %v357_v45, 0.0 }
 0x2ce   :  { %517 = vpow2.f32 %v371_v48  ;;  %v373_v50 = vmul.f32 1.442695, %v370_v49 }
 0x2d0   :  { %519 = vpow2.f32 %v373_v50 }
 0x2d8   :  { %v518_v53 = vpop.eup %517 }
 0x2d9   :  { %v375_v54 = vsel %vm365_vm5, %v367_v52, %v518_v53 }
 0x2da   :  { %v520_v56 = vpop.eup %519  ;;  %v377_v57 = vsel %vm364_vm4, %v375_v54, %v354_v41 }
 0x2db   :  { %379 = vst [vmem:[#allocation8] sm:$0xff] %v377_v57  ;;  %v376_v58 = vsel %vm366_vm6, %v368_v55, %v520_v56 }
 0x2dc   :  { %v378_v59 = vsel %vm364_vm4, %v376_v58, %v357_v45 }
 0x2dd   :  { %380 = vst [vmem:[#allocation8 + $0x8] sm:$0xff] %v378_v59 }
 0x2de   :  { %598 = shalt.err (!%p595_p0)
}
 0x2df   :  { %s599_s8 = scalar_lea.hbm %s747_s4, 256 }
 0x2e0   :  { %p600_p1 = scmp.ne.s32.totalorder %s747_s4, %s599_s8  ;;  %p603_p2 = scmp.lt.u32.totalorder %s599_s8, %s747_s4 }
 0x2e2   :  { %p605_p3 = pnand %p603_p2, %p600_p1 }
 0x2e4   :  { %608 = shalt.err (!%p605_p3)
}
 0x2e5   :  { %s623_s1 = smov 128   ;;  %s624_s13 = smov 8  }
 0x2e6   :  { %392 = dma.vmem_to_hbm [thread:$0]  %s387_s3, 256, %s747_s4, [#allocation4], %s623_s1, %s623_s1, %s624_s13  }
 0x2e7   :  { %613 = dma.done.wait [#allocation4], 256  }
 0x2e8   :  { %614 = vsyncadd [#allocation4], 4294967040 }
 0x2e9   :  { %396 = vsyncpa [#allocation3], 1 }
 0x2ea   :  { %397 = vsyncpa [#allocation6], 1 }
 0x2eb   :  { %398 = vsyncpa [#allocation4], 1 }

</bundles_post_ra>
